<compile_context>
chip_gen: v5e
topology: v5e:2x2
jax: 0.10.0
libtpu: 0.0.40
codegen_flags: <defaults>
</compile_context>

<pallas_src>
import jax
import jax.numpy as jnp
from jax import lax
from jax.experimental import pallas as pl
from jax.experimental.pallas import tpu as pltpu


def basic_conv_block_kernel(x_ref, m1_ref, b1_ref, m2_ref, b2_ref, o_ref, pad_ref):
    """Fused residual conv block for one batch element.

    x_ref  : (1, S, L)   input super-rows (pre-activation; residual source)
    m*_ref : (3, L, L)   banded conv matrices, one per vertical super-tap ds
    b*_ref : (1, L)      biases tiled over (P*W)
    o_ref  : (1, S, L)   output super-rows
    pad_ref: (S+2, L)    VMEM scratch: vertically zero-padded activation
    """
    S = o_ref.shape[1]
    L = o_ref.shape[2]

    # Zero only the two vertical pad rows (interior is fully overwritten below).
    zero_row = jnp.zeros((1, L), pad_ref.dtype)
    pad_ref[0:1, :] = zero_row
    pad_ref[S + 1:S + 2, :] = zero_row

    x2d = x_ref[0]                                    # (S, L)

    def conv3x3(m_ref, b_ref):
        # Sum over the 3 vertical super-taps; horizontal taps, channel mixing
        # and row-pairing are folded into each (L, L) band matrix.
        acc = jnp.dot(pad_ref[0:S, :], m_ref[0],
                      preferred_element_type=jnp.float32)
        acc = acc + jnp.dot(pad_ref[1:S + 1, :], m_ref[1],
                            preferred_element_type=jnp.float32)
        acc = acc + jnp.dot(pad_ref[2:S + 2, :], m_ref[2],
                            preferred_element_type=jnp.float32)
        return acc + b_ref[...]

    # h = act(x); h = conv1(h); h = act(h)
    pad_ref[1:S + 1, :] = jnp.maximum(x2d, 0.0)
    h1 = jnp.maximum(conv3x3(m1_ref, b1_ref), 0.0)

    # h = conv2(h); out = h + identity (pre-activation input)
    pad_ref[1:S + 1, :] = h1
    out = conv3x3(m2_ref, b2_ref) + x2d
    o_ref[0] = out.astype(o_ref.dtype)


def _band_matrices(w_hwio, W, C):
    """Fold a (3,3,Cin,Cout) HWIO kernel into 3 banded (W*C, W*C) matrices.

    B[dy][(w_out + dx - 1)*C + ci, w_out*C + co] = w_hwio[dy, dx, ci, co]
    Rows with w_out + dx - 1 outside [0, W) are dropped == horizontal zero pad.
    """
    eye_w = jnp.eye(W, dtype=w_hwio.dtype)
    mats = []
    for dy in range(3):
        m = jnp.zeros(((W + 2) * C, W * C), w_hwio.dtype)
        for dx in range(3):
            block = jnp.kron(eye_w, w_hwio[dy, dx])             # (W*C, W*C)
            m = m + jnp.pad(block, ((dx * C, (2 - dx) * C), (0, 0)))
        mats.append(m[C:C + W * C, :])                          # crop h-pad rows
    return mats                                                 # list of 3 (WC, WC)


def _super_band_matrices(w_hwio, W, C, P):
    """Band matrices for P image rows packed per super-row: (3, P*W*C, P*W*C).

    Block (r_in, r_out) of M[ds] is B[dy+1] where dy = P*ds + r_in - r_out,
    and zero when |dy| > 1. Output super-row s only ever needs super-rows
    s-1, s, s+1, so 3 taps suffice for any P >= 1.
    """
    WC = W * C
    B = _band_matrices(w_hwio, W, C)
    zero = jnp.zeros((WC, WC), w_hwio.dtype)
    mats = []
    for ds in (-1, 0, 1):
        rows = []
        for r_in in range(P):
            row_blocks = []
            for r_out in range(P):
                dy = P * ds + r_in - r_out
                row_blocks.append(B[dy + 1] if -1 <= dy <= 1 else zero)
            rows.append(jnp.concatenate(row_blocks, axis=1))
        mats.append(jnp.concatenate(rows, axis=0))
    return jnp.stack(mats)                                      # (3, P*WC, P*WC)


@jax.jit
def basic_conv_block(x, w1, b1, w2, b2):
    """x: (N, H, W, C) f32 (NHWC); w*: (3, 3, C, C) HWIO; b*: (C,)."""
    N, H, W, C = x.shape
    WC = W * C

    # Row-packing factor: pack P image rows per super-row so the lane dim
    # reaches >= 128 (full vreg, unmasked stores). Must divide H; falls back
    # to P=1 (still correct, just narrower stores) otherwise.
    P = 1
    if WC < 128:
        cand = max(1, 128 // WC)
        for p in range(min(cand, H), 0, -1):
            if H % p == 0:
                P = p
                break
    S = H // P
    L = P * WC

    x_rows = x.reshape(N, S, L)                 # free: same row-major bytes
    m1 = _super_band_matrices(w1, W, C, P)
    m2 = _super_band_matrices(w2, W, C, P)
    b1r = jnp.tile(b1, P * W).reshape(1, L)
    b2r = jnp.tile(b2, P * W).reshape(1, L)

    out_rows = pl.pallas_call(
        basic_conv_block_kernel,
        out_shape=jax.ShapeDtypeStruct((N, S, L), x.dtype),
        grid_spec=pltpu.PrefetchScalarGridSpec(
            num_scalar_prefetch=0,
            grid=(N,),
            in_specs=[
                pl.BlockSpec((1, S, L), lambda n: (n, 0, 0)),
                pl.BlockSpec((3, L, L), lambda n: (0, 0, 0)),
                pl.BlockSpec((1, L), lambda n: (0, 0)),
                pl.BlockSpec((3, L, L), lambda n: (0, 0, 0)),
                pl.BlockSpec((1, L), lambda n: (0, 0)),
            ],
            out_specs=pl.BlockSpec((1, S, L), lambda n: (n, 0, 0)),
            scratch_shapes=[pltpu.VMEM((S + 2, L), jnp.float32)],
        ),
        compiler_params=pltpu.CompilerParams(
            dimension_semantics=("parallel",),
        ),
    )(x_rows, m1, b1r, m2, b2r)

    return out_rows.reshape(N, H, W, C)


def reference_block(x, w1, b1, w2, b2):
    """Plain-JAX reference with the exact PyTorch forward semantics (NHWC)."""
    def conv(h, w, b):
        y = lax.conv_general_dilated(
            h, w, window_strides=(1, 1), padding="SAME",
            dimension_numbers=("NHWC", "HWIO", "NHWC"),
            precision=lax.Precision.HIGHEST)
        return y + b
    a = jax.nn.relu(x)
    y = conv(a, w1, b1)
    y = jax.nn.relu(y)
    y = conv(y, w2, b2)
    return y + x


if __name__ == "__main__":
    # Small shapes consistent with the module: batch=2, channels=4, spatial=16.
    # (PyTorch convention would be NCHW [2, 4, 16, 16]; the kernel uses NHWC.)
    N, C, H, W = 2, 4, 16, 16
    key = jax.random.PRNGKey(0)
    kx, kw1, kb1, kw2, kb2 = jax.random.split(key, 5)

    x = jax.random.normal(kx, (N, H, W, C), jnp.float32)          # NHWC
    w1 = 0.1 * jax.random.normal(kw1, (3, 3, C, C), jnp.float32)  # HWIO
    b1 = 0.1 * jax.random.normal(kb1, (C,), jnp.float32)
    w2 = 0.1 * jax.random.normal(kw2, (3, 3, C, C), jnp.float32)
    b2 = 0.1 * jax.random.normal(kb2, (C,), jnp.float32)

    out = jax.block_until_ready(basic_conv_block(x, w1, b1, w2, b2))
    ref = jax.block_until_ready(reference_block(x, w1, b1, w2, b2))

    assert out.shape == (N, H, W, C) and out.dtype == jnp.float32
    assert jnp.allclose(out, ref, atol=1e-4, rtol=1e-4), "mismatch vs reference"

    print("KERNEL_OK")
</pallas_src>

<mosaic_0001>
module attributes {stable_mosaic.version = 11 : i64} {
  func.func @basic_conv_block_kernel(%arg0: i32, %arg1: memref<1x8x128xf32, #tpu.memory_space<vmem>>, %arg2: memref<3x128x128xf32, #tpu.memory_space<vmem>>, %arg3: memref<1x128xf32, #tpu.memory_space<vmem>>, %arg4: memref<3x128x128xf32, #tpu.memory_space<vmem>>, %arg5: memref<1x128xf32, #tpu.memory_space<vmem>>, %arg6: memref<1x8x128xf32, #tpu.memory_space<vmem>>, %arg7: memref<10x128xf32, #tpu.memory_space<vmem>>) attributes {dimension_semantics = [#tpu.dimension_semantics<parallel>], iteration_bounds = array<i64: 2>, scalar_prefetch = 0 : i64, scratch_operands = 1 : i64, tpu.core_type = #tpu.core_type<tc>, window_params = [{transform_indices = @transform_0, window_bounds = array<i64: 1, 8, 128>}, {pipeline_mode = #tpu.pipeline_mode<synchronous>, transform_indices = @transform_1, window_bounds = array<i64: 3, 128, 128>}, {pipeline_mode = #tpu.pipeline_mode<synchronous>, transform_indices = @transform_2, window_bounds = array<i64: 1, 128>}, {pipeline_mode = #tpu.pipeline_mode<synchronous>, transform_indices = @transform_3, window_bounds = array<i64: 3, 128, 128>}, {pipeline_mode = #tpu.pipeline_mode<synchronous>, transform_indices = @transform_4, window_bounds = array<i64: 1, 128>}, {transform_indices = @transform_5, window_bounds = array<i64: 1, 8, 128>}]} {
    %cst = arith.constant 0.000000e+00 : f32
    %0 = vector.broadcast %cst : f32 to vector<1x128xf32>
    %c0 = arith.constant 0 : index
    %c0_0 = arith.constant 0 : index
    %1 = vector.load %arg7[%c0, %c0_0] : memref<10x128xf32, #tpu.memory_space<vmem>>, vector<1x128xf32>
    tpu.vector_store %arg7[%c0, %c0_0], %0 {strides = array<i32>} : memref<10x128xf32, #tpu.memory_space<vmem>>, vector<1x128xf32>,
    %c9 = arith.constant 9 : index
    %c0_1 = arith.constant 0 : index
    %2 = vector.load %arg7[%c9, %c0_1] : memref<10x128xf32, #tpu.memory_space<vmem>>, vector<1x128xf32>
    tpu.vector_store %arg7[%c9, %c0_1], %0 {strides = array<i32>} : memref<10x128xf32, #tpu.memory_space<vmem>>, vector<1x128xf32>,
    %c0_2 = arith.constant 0 : index
    %c0_3 = arith.constant 0 : index
    %c0_4 = arith.constant 0 : index
    %3 = vector.load %arg1[%c0_2, %c0_3, %c0_4] : memref<1x8x128xf32, #tpu.memory_space<vmem>>, vector<1x8x128xf32>
    %4 = vector.shape_cast %3 : vector<1x8x128xf32> to vector<8x128xf32>
    %cst_5 = arith.constant 0.000000e+00 : f32
    %5 = vector.broadcast %cst_5 : f32 to vector<8x128xf32>
    %6 = arith.maximumf %4, %5 : vector<8x128xf32>
    %c1 = arith.constant 1 : index
    %c0_6 = arith.constant 0 : index
    %7 = vector.load %arg7[%c1, %c0_6] : memref<10x128xf32, #tpu.memory_space<vmem>>, vector<8x128xf32>
    tpu.vector_store %arg7[%c1, %c0_6], %6 {strides = array<i32>} : memref<10x128xf32, #tpu.memory_space<vmem>>, vector<8x128xf32>,
    %c0_7 = arith.constant 0 : index
    %c0_8 = arith.constant 0 : index
    %8 = vector.load %arg7[%c0_7, %c0_8] : memref<10x128xf32, #tpu.memory_space<vmem>>, vector<8x128xf32>
    %c0_9 = arith.constant 0 : index
    %c0_10 = arith.constant 0 : index
    %c0_11 = arith.constant 0 : index
    %9 = vector.load %arg2[%c0_9, %c0_10, %c0_11] : memref<3x128x128xf32, #tpu.memory_space<vmem>>, vector<1x128x128xf32>
    %10 = vector.shape_cast %9 : vector<1x128x128xf32> to vector<128x128xf32>
    %cst_12 = arith.constant dense<0.000000e+00> : vector<8x128xf32>
    %11 = tpu.matmul %8, %10, %cst_12 {dimension_numbers = #tpu.dot_dimension_numbers<[1], [0], [0], [1], [0, 0, 1, 1], [], []>} : vector<8x128xf32>, vector<128x128xf32>, vector<8x128xf32> -> vector<8x128xf32>
    %c1_13 = arith.constant 1 : index
    %c0_14 = arith.constant 0 : index
    %12 = vector.load %arg7[%c1_13, %c0_14] : memref<10x128xf32, #tpu.memory_space<vmem>>, vector<8x128xf32>
    %c1_15 = arith.constant 1 : index
    %c0_16 = arith.constant 0 : index
    %c0_17 = arith.constant 0 : index
    %13 = vector.load %arg2[%c1_15, %c0_16, %c0_17] : memref<3x128x128xf32, #tpu.memory_space<vmem>>, vector<1x128x128xf32>
    %14 = vector.shape_cast %13 : vector<1x128x128xf32> to vector<128x128xf32>
    %cst_18 = arith.constant dense<0.000000e+00> : vector<8x128xf32>
    %15 = tpu.matmul %12, %14, %cst_18 {dimension_numbers = #tpu.dot_dimension_numbers<[1], [0], [0], [1], [0, 0, 1, 1], [], []>} : vector<8x128xf32>, vector<128x128xf32>, vector<8x128xf32> -> vector<8x128xf32>
    %16 = arith.addf %11, %15 : vector<8x128xf32>
    %c2 = arith.constant 2 : index
    %c0_19 = arith.constant 0 : index
    %17 = vector.load %arg7[%c2, %c0_19] : memref<10x128xf32, #tpu.memory_space<vmem>>, vector<8x128xf32>
    %c2_20 = arith.constant 2 : index
    %c0_21 = arith.constant 0 : index
    %c0_22 = arith.constant 0 : index
    %18 = vector.load %arg2[%c2_20, %c0_21, %c0_22] : memref<3x128x128xf32, #tpu.memory_space<vmem>>, vector<1x128x128xf32>
    %19 = vector.shape_cast %18 : vector<1x128x128xf32> to vector<128x128xf32>
    %cst_23 = arith.constant dense<0.000000e+00> : vector<8x128xf32>
    %20 = tpu.matmul %17, %19, %cst_23 {dimension_numbers = #tpu.dot_dimension_numbers<[1], [0], [0], [1], [0, 0, 1, 1], [], []>} : vector<8x128xf32>, vector<128x128xf32>, vector<8x128xf32> -> vector<8x128xf32>
    %21 = arith.addf %16, %20 : vector<8x128xf32>
    %c0_24 = arith.constant 0 : index
    %c0_25 = arith.constant 0 : index
    %22 = vector.load %arg3[%c0_24, %c0_25] : memref<1x128xf32, #tpu.memory_space<vmem>>, vector<1x128xf32>
    %23 = vector.broadcast %22 : vector<1x128xf32> to vector<8x128xf32>
    %24 = arith.addf %21, %23 : vector<8x128xf32>
    %cst_26 = arith.constant 0.000000e+00 : f32
    %25 = vector.broadcast %cst_26 : f32 to vector<8x128xf32>
    %26 = arith.maximumf %24, %25 : vector<8x128xf32>
    %c1_27 = arith.constant 1 : index
    %c0_28 = arith.constant 0 : index
    %27 = vector.load %arg7[%c1_27, %c0_28] : memref<10x128xf32, #tpu.memory_space<vmem>>, vector<8x128xf32>
    tpu.vector_store %arg7[%c1_27, %c0_28], %26 {strides = array<i32>} : memref<10x128xf32, #tpu.memory_space<vmem>>, vector<8x128xf32>,
    %c0_29 = arith.constant 0 : index
    %c0_30 = arith.constant 0 : index
    %28 = vector.load %arg7[%c0_29, %c0_30] : memref<10x128xf32, #tpu.memory_space<vmem>>, vector<8x128xf32>
    %c0_31 = arith.constant 0 : index
    %c0_32 = arith.constant 0 : index
    %c0_33 = arith.constant 0 : index
    %29 = vector.load %arg4[%c0_31, %c0_32, %c0_33] : memref<3x128x128xf32, #tpu.memory_space<vmem>>, vector<1x128x128xf32>
    %30 = vector.shape_cast %29 : vector<1x128x128xf32> to vector<128x128xf32>
    %cst_34 = arith.constant dense<0.000000e+00> : vector<8x128xf32>
    %31 = tpu.matmul %28, %30, %cst_34 {dimension_numbers = #tpu.dot_dimension_numbers<[1], [0], [0], [1], [0, 0, 1, 1], [], []>} : vector<8x128xf32>, vector<128x128xf32>, vector<8x128xf32> -> vector<8x128xf32>
    %c1_35 = arith.constant 1 : index
    %c0_36 = arith.constant 0 : index
    %32 = vector.load %arg7[%c1_35, %c0_36] : memref<10x128xf32, #tpu.memory_space<vmem>>, vector<8x128xf32>
    %c1_37 = arith.constant 1 : index
    %c0_38 = arith.constant 0 : index
    %c0_39 = arith.constant 0 : index
    %33 = vector.load %arg4[%c1_37, %c0_38, %c0_39] : memref<3x128x128xf32, #tpu.memory_space<vmem>>, vector<1x128x128xf32>
    %34 = vector.shape_cast %33 : vector<1x128x128xf32> to vector<128x128xf32>
    %cst_40 = arith.constant dense<0.000000e+00> : vector<8x128xf32>
    %35 = tpu.matmul %32, %34, %cst_40 {dimension_numbers = #tpu.dot_dimension_numbers<[1], [0], [0], [1], [0, 0, 1, 1], [], []>} : vector<8x128xf32>, vector<128x128xf32>, vector<8x128xf32> -> vector<8x128xf32>
    %36 = arith.addf %31, %35 : vector<8x128xf32>
    %c2_41 = arith.constant 2 : index
    %c0_42 = arith.constant 0 : index
    %37 = vector.load %arg7[%c2_41, %c0_42] : memref<10x128xf32, #tpu.memory_space<vmem>>, vector<8x128xf32>
    %c2_43 = arith.constant 2 : index
    %c0_44 = arith.constant 0 : index
    %c0_45 = arith.constant 0 : index
    %38 = vector.load %arg4[%c2_43, %c0_44, %c0_45] : memref<3x128x128xf32, #tpu.memory_space<vmem>>, vector<1x128x128xf32>
    %39 = vector.shape_cast %38 : vector<1x128x128xf32> to vector<128x128xf32>
    %cst_46 = arith.constant dense<0.000000e+00> : vector<8x128xf32>
    %40 = tpu.matmul %37, %39, %cst_46 {dimension_numbers = #tpu.dot_dimension_numbers<[1], [0], [0], [1], [0, 0, 1, 1], [], []>} : vector<8x128xf32>, vector<128x128xf32>, vector<8x128xf32> -> vector<8x128xf32>
    %41 = arith.addf %36, %40 : vector<8x128xf32>
    %c0_47 = arith.constant 0 : index
    %c0_48 = arith.constant 0 : index
    %42 = vector.load %arg5[%c0_47, %c0_48] : memref<1x128xf32, #tpu.memory_space<vmem>>, vector<1x128xf32>
    %43 = vector.broadcast %42 : vector<1x128xf32> to vector<8x128xf32>
    %44 = arith.addf %41, %43 : vector<8x128xf32>
    %45 = arith.addf %44, %4 : vector<8x128xf32>
    %c0_49 = arith.constant 0 : index
    %c0_50 = arith.constant 0 : index
    %c0_51 = arith.constant 0 : index
    %46 = vector.load %arg6[%c0_49, %c0_50, %c0_51] : memref<1x8x128xf32, #tpu.memory_space<vmem>>, vector<1x8x128xf32>
    %47 = vector.shape_cast %46 : vector<1x8x128xf32> to vector<8x128xf32>
    %48 = vector.shape_cast %45 : vector<8x128xf32> to vector<1x8x128xf32>
    tpu.vector_store %arg6[%c0_49, %c0_50, %c0_51], %48 {strides = array<i32>} : memref<1x8x128xf32, #tpu.memory_space<vmem>>, vector<1x8x128xf32>,
    return
  }
  func.func @transform_0(%arg0: i32) -> (i32, i32, i32) {
    %c0_i32 = arith.constant 0 : i32
    %c0_i32_0 = arith.constant 0 : i32
    %c0_i32_1 = arith.constant 0 : i32
    return %arg0, %c0_i32, %c0_i32_0 : i32, i32, i32
  }
  func.func @transform_1(%arg0: i32) -> (i32, i32, i32) {
    %c0_i32 = arith.constant 0 : i32
    %c0_i32_0 = arith.constant 0 : i32
    %c0_i32_1 = arith.constant 0 : i32
    %c0_i32_2 = arith.constant 0 : i32
    return %c0_i32, %c0_i32_0, %c0_i32_1 : i32, i32, i32
  }
  func.func @transform_2(%arg0: i32) -> (i32, i32) {
    %c0_i32 = arith.constant 0 : i32
    %c0_i32_0 = arith.constant 0 : i32
    %c0_i32_1 = arith.constant 0 : i32
    return %c0_i32, %c0_i32_0 : i32, i32
  }
  func.func @transform_3(%arg0: i32) -> (i32, i32, i32) {
    %c0_i32 = arith.constant 0 : i32
    %c0_i32_0 = arith.constant 0 : i32
    %c0_i32_1 = arith.constant 0 : i32
    %c0_i32_2 = arith.constant 0 : i32
    return %c0_i32, %c0_i32_0, %c0_i32_1 : i32, i32, i32
  }
  func.func @transform_4(%arg0: i32) -> (i32, i32) {
    %c0_i32 = arith.constant 0 : i32
    %c0_i32_0 = arith.constant 0 : i32
    %c0_i32_1 = arith.constant 0 : i32
    return %c0_i32, %c0_i32_0 : i32, i32
  }
  func.func @transform_5(%arg0: i32) -> (i32, i32, i32) {
    %c0_i32 = arith.constant 0 : i32
    %c0_i32_0 = arith.constant 0 : i32
    %c0_i32_1 = arith.constant 0 : i32
    return %arg0, %c0_i32, %c0_i32_0 : i32, i32, i32
  }
}

</mosaic_0001>

<bundles_post_ra>
// kernel: tile.13
= control target key start
LH: loop header
LB: loop body
LE: loop exit
PB: predicated region body
PF: predicated region fallthrough
CT: control target
= control target key end

     0   :  { %s40_s0 = inlined_call_operand.vmem [shape: f32[4], index: 0, kind: input, shape index: {}]   ;;  %s41_s1 = inlined_call_operand.vmem [shape: f32[32,4], index: 1, kind: output, shape index: {}]  }
   0x1   :  { %v4_v0 = vld [vmem:[%s40_s0] ss:$0 sm:$0xff] }
   0x2   :  { %5 = vst [vmem:[%s41_s1] sm:$0xff] %v4_v0 }
   0x3   :  { %12 = vst [vmem:[%s41_s1 + $0x8] sm:$0xff] %v4_v0 }
   0x4   :  { %13 = vst [vmem:[%s41_s1 + $0x10] sm:$0xff] %v4_v0 }
   0x5   :  { %14 = vst [vmem:[%s41_s1 + $0x18] sm:$0xff] %v4_v0 }

// kernel: tile.14
= control target key start
LH: loop header
LB: loop body
LE: loop exit
PB: predicated region body
PF: predicated region fallthrough
CT: control target
= control target key end

     0   :  { %s259_s10 = smov 124   ;;  %s260_s11 = smov 116   ;;  %vm3_vm0 = vcmask 31744   ;;  %vm9_vm1 = vcmask 1048544   ;;  %vm15_vm2 = vcmask 1015744   ;;  %vm21_vm3 = vcmask 982944   ;;  %s399_s0 = inlined_call_operand.vmem [shape: f32[32,4], index: 0, kind: input, shape index: {}]   ;;  %s400_s1 = inlined_call_operand.vmem [shape: f32[1,128], index: 1, kind: output, shape index: {}]  }
   0x1   :  { %v197_v0 = vld [vmem:[%s399_s0 + $0x1f] sm:$0x1]   ;;  %v199_v1 = vld [vmem:[%s399_s0 + $0x1d] sm:$0x1]   ;;  %v201_v2 = vld [vmem:[%s399_s0 + $0x1b] sm:$0x1]  }
   0x2   :  { %7 = vrot.lane.b32.xlu0 %v197_v0, %s259_s10  ;;  %19 = vrot.lane.b32.xlu1 %v199_v1, %s260_s11  ;;  %s261_s14 = smov 108   ;;  %v198_v3 = vld [vmem:[%s399_s0 + $0x1e] sm:$0x1]   ;;  %v200_v4 = vld [vmem:[%s399_s0 + $0x1c] sm:$0x1]   ;;  %s262_s19 = smov 120  }
   0x3   :  { %31 = vrot.lane.b32.xlu2 %v201_v2, %s261_s14  ;;  %s263_s20 = smov 112   ;;  %v202_v5 = vld [vmem:[%s399_s0 + $0x1a] sm:$0x1]   ;;  %s264_s23 = smov 104   ;;  %v203_v6 = vld [vmem:[%s399_s0 + $0x19] sm:$0x1]  }
   0x4   :  { %v204_v7 = vld [vmem:[%s399_s0 + $0x18] sm:$0x1]   ;;  %s265_s28 = smov 100   ;;  %s266_s29 = smov 96   ;;  %v205_v8 = vld [vmem:[%s399_s0 + $0x17] sm:$0x1]  }
   0x5   :  { %s267_s3 = smov 92   ;;  %v206_v9 = vld [vmem:[%s399_s0 + $0x16] sm:$0x1]   ;;  %v207_v10 = vld [vmem:[%s399_s0 + $0x15] sm:$0x1]   ;;  %s268_s8 = smov 88  }
   0x6   :  { %s269_s9 = smov 84   ;;  %v208_v11 = vld [vmem:[%s399_s0 + $0x14] sm:$0x1]   ;;  %s270_s12 = smov 80   ;;  %v209_v12 = vld [vmem:[%s399_s0 + $0x13] sm:$0x1]  }
   0x7   :  { %v210_v13 = vld [vmem:[%s399_s0 + $0x12] sm:$0x1]   ;;  %s271_s17 = smov 76   ;;  %s272_s18 = smov 72   ;;  %v211_v14 = vld [vmem:[%s399_s0 + $0x11] sm:$0x1]  }
   0x8   :  { %s273_s21 = smov 68   ;;  %v212_v15 = vld [vmem:[%s399_s0 + $0x10] sm:$0x1]   ;;  %v213_v16 = vld [vmem:[%s399_s0 + $0xf] sm:$0x1]   ;;  %s274_s26 = smov 64  }
   0x9   :  { %s275_s27 = smov 60   ;;  %v214_v17 = vld [vmem:[%s399_s0 + $0xe] sm:$0x1]   ;;  %s276_s30 = smov 56   ;;  %v215_v18 = vld [vmem:[%s399_s0 + $0xd] sm:$0x1]  }
   0xa   :  { %13 = vrot.lane.b32.xlu0 %v198_v3, %s262_s19  ;;  %25 = vrot.lane.b32.xlu1 %v200_v4, %s263_s20  ;;  %v216_v19 = vld [vmem:[%s399_s0 + $0xc] sm:$0x1]   ;;  %s277_s6 = smov 52   ;;  %s278_s7 = smov 48   ;;  %v217_v20 = vld [vmem:[%s399_s0 + $0xb] sm:$0x1]  }
   0xb   :  { %37 = vrot.lane.b32.xlu2 %v202_v5, %s264_s23  ;;  %s279_s10 = smov 44   ;;  %v218_v21 = vld [vmem:[%s399_s0 + $0xa] sm:$0x1]   ;;  %v219_v22 = vld [vmem:[%s399_s0 + $0x9] sm:$0x1]   ;;  %s280_s15 = smov 40  }
   0xc   :  { %s281_s16 = smov 36   ;;  %v220_v23 = vld [vmem:[%s399_s0 + $0x8] sm:$0x1]   ;;  %s282_s19 = smov 32   ;;  %v221_v24 = vld [vmem:[%s399_s0 + $0x7] sm:$0x1]  }
   0xd   :  { %v222_v25 = vld [vmem:[%s399_s0 + $0x6] sm:$0x1]   ;;  %s283_s24 = smov 28   ;;  %s284_s25 = smov 24   ;;  %v223_v26 = vld [vmem:[%s399_s0 + $0x5] sm:$0x1]  }
   0xe   :  { %v224_v27 = vld [vmem:[%s399_s0 + $0x4] sm:$0x1]   ;;  %v225_v28 = vld [vmem:[%s399_s0 + $0x3] sm:$0x1]   ;;  %s286_s4 = smov 16   ;;  %s287_s5 = smov 12  }
   0xf   :  { %v226_v29 = vld [vmem:[%s399_s0 + $0x2] sm:$0x1]   ;;  %v227_v30 = vld [vmem:[%s399_s0 + $0x1] sm:$0x1]   ;;  %s289_s11 = smov 4   ;;  %vm27_vm4 = vcmask 950144  }
  0x10   :  { %v2_v31 = vld [vmem:[%s399_s0] sm:$0x1]   ;;  %vm33_vm5 = vcmask 917344   ;;  %vm39_vm6 = vcmask 884544   ;;  %vm45_vm7 = vcmask 851744   ;;  %vm51_vm8 = vcmask 818944  }
  0x11   :  { %4 = vst.msk [vmem:[#allocation0] sm:$0x1] %vm3_vm0, %v2_v31   ;;  %vm57_vm9 = vcmask 786144   ;;  %vm63_vm10 = vcmask 753344   ;;  %vm69_vm11 = vcmask 720544   ;;  %vm75_vm12 = vcmask 687744  }
  0x12   :  { %43 = vrot.lane.b32.xlu0 %v203_v6, %s265_s28  ;;  %49 = vrot.lane.b32.xlu1 %v204_v7, %s266_s29  ;;  %s285_s28 = smov 20   ;;  %vm81_vm13 = vcmask 654944   ;;  %vm87_vm14 = vcmask 622144   ;;  %vm93_vm15 = vcmask 589344   ;;  %vm99_vm0 = vcmask 556544  }
  0x13   :  { %55 = vrot.lane.b32.xlu2 %v205_v8, %s267_s3 }
  0x1a   :  { %61 = vrot.lane.b32.xlu0 %v206_v9, %s268_s8  ;;  %67 = vrot.lane.b32.xlu1 %v207_v10, %s269_s9  ;;  %s288_s8 = smov 8  }
  0x1b   :  { %73 = vrot.lane.b32.xlu2 %v208_v11, %s270_s12 }
  0x22   :  { %79 = vrot.lane.b32.xlu0 %v209_v12, %s271_s17  ;;  %85 = vrot.lane.b32.xlu1 %v210_v13, %s272_s18 }
  0x23   :  { %91 = vrot.lane.b32.xlu2 %v211_v14, %s273_s21 }
  0x2a   :  { %97 = vrot.lane.b32.xlu0 %v212_v15, %s274_s26  ;;  %103 = vrot.lane.b32.xlu1 %v213_v16, %s275_s27 }
  0x2b   :  { %109 = vrot.lane.b32.xlu2 %v214_v17, %s276_s30 }
  0x32   :  { %115 = vrot.lane.b32.xlu0 %v215_v18, %s277_s6  ;;  %121 = vrot.lane.b32.xlu1 %v216_v19, %s278_s7 }
  0x33   :  { %127 = vrot.lane.b32.xlu2 %v217_v20, %s279_s10 }
  0x3a   :  { %133 = vrot.lane.b32.xlu0 %v218_v21, %s280_s15  ;;  %139 = vrot.lane.b32.xlu1 %v219_v22, %s281_s16 }
  0x3b   :  { %145 = vrot.lane.b32.xlu2 %v220_v23, %s282_s19 }
  0x42   :  { %151 = vrot.lane.b32.xlu0 %v221_v24, %s283_s24  ;;  %157 = vrot.lane.b32.xlu1 %v222_v25, %s284_s25 }
  0x43   :  { %163 = vrot.lane.b32.xlu2 %v223_v26, %s285_s28 }
  0x4a   :  { %169 = vrot.lane.b32.xlu0 %v224_v27, %s286_s4  ;;  %175 = vrot.lane.b32.xlu1 %v225_v28, %s287_s5 }
  0x4b   :  { %181 = vrot.lane.b32.xlu2 %v226_v29, %s288_s8 }
  0x52   :  { %187 = vrot.lane.b32.xlu0 %v227_v30, %s289_s11 }
  0x5d   :  { %v32_v32 = vpop.permute.xlu2 %31  }
  0x65   :  { %v38_v33 = vpop.permute.xlu2 %37  }
  0x6d   :  { %v56_v34 = vpop.permute.xlu2 %55  }
  0x74   :  { %v8_v35 = vpop.permute.xlu0 %7   ;;  %v20_v36 = vpop.permute.xlu1 %19  }
  0x75   :  { %10 = vst.msk [vmem:[#allocation0] sm:$0x1] %vm9_vm1, %v8_v35   ;;  %v74_v37 = vpop.permute.xlu2 %73   ;;  %vm105_vm1 = vcmask 523744  }
  0x7c   :  { %v14_v38 = vpop.permute.xlu0 %13   ;;  %v26_v39 = vpop.permute.xlu1 %25  }
  0x7d   :  { %16 = vst.msk [vmem:[#allocation0] sm:$0x1] %vm15_vm2, %v14_v38   ;;  %v92_v40 = vpop.permute.xlu2 %91   ;;  %vm111_vm2 = vcmask 490944  }
  0x7e   :  { %22 = vst.msk [vmem:[#allocation0] sm:$0x1] %vm21_vm3, %v20_v36   ;;  %vm117_vm3 = vcmask 458144  }
  0x7f   :  { %28 = vst.msk [vmem:[#allocation0] sm:$0x1] %vm27_vm4, %v26_v39   ;;  %vm123_vm4 = vcmask 425344  }
  0x80   :  { %34 = vst.msk [vmem:[#allocation0] sm:$0x1] %vm33_vm5, %v32_v32   ;;  %vm129_vm5 = vcmask 392544  }
  0x81   :  { %40 = vst.msk [vmem:[#allocation0] sm:$0x1] %vm39_vm6, %v38_v33   ;;  %vm135_vm6 = vcmask 359744  }
  0x84   :  { %v44_v41 = vpop.permute.xlu0 %43   ;;  %v50_v42 = vpop.permute.xlu1 %49  }
  0x85   :  { %46 = vst.msk [vmem:[#allocation0] sm:$0x1] %vm45_vm7, %v44_v41   ;;  %v110_v43 = vpop.permute.xlu2 %109   ;;  %vm141_vm7 = vcmask 326944  }
  0x86   :  { %52 = vst.msk [vmem:[#allocation0] sm:$0x1] %vm51_vm8, %v50_v42   ;;  %vm147_vm8 = vcmask 294144  }
  0x87   :  { %58 = vst.msk [vmem:[#allocation0] sm:$0x1] %vm57_vm9, %v56_v34   ;;  %vm153_vm9 = vcmask 261344  }
  0x8c   :  { %v62_v44 = vpop.permute.xlu0 %61   ;;  %v68_v45 = vpop.permute.xlu1 %67  }
  0x8d   :  { %64 = vst.msk [vmem:[#allocation0] sm:$0x1] %vm63_vm10, %v62_v44   ;;  %v128_v46 = vpop.permute.xlu2 %127   ;;  %vm159_vm10 = vcmask 228544  }
  0x8e   :  { %70 = vst.msk [vmem:[#allocation0] sm:$0x1] %vm69_vm11, %v68_v45   ;;  %vm165_vm11 = vcmask 195744  }
  0x8f   :  { %76 = vst.msk [vmem:[#allocation0] sm:$0x1] %vm75_vm12, %v74_v37   ;;  %vm171_vm12 = vcmask 162944  }
  0x94   :  { %v80_v47 = vpop.permute.xlu0 %79   ;;  %v86_v48 = vpop.permute.xlu1 %85  }
  0x95   :  { %82 = vst.msk [vmem:[#allocation0] sm:$0x1] %vm81_vm13, %v80_v47   ;;  %v146_v49 = vpop.permute.xlu2 %145   ;;  %vm177_vm13 = vcmask 130144  }
  0x96   :  { %88 = vst.msk [vmem:[#allocation0] sm:$0x1] %vm87_vm14, %v86_v48   ;;  %vm183_vm14 = vcmask 97344  }
  0x97   :  { %94 = vst.msk [vmem:[#allocation0] sm:$0x1] %vm93_vm15, %v92_v40   ;;  %vm189_vm15 = vcmask 64544  }
  0x9c   :  { %v98_v50 = vpop.permute.xlu0 %97   ;;  %v104_v51 = vpop.permute.xlu1 %103  }
  0x9d   :  { %100 = vst.msk [vmem:[#allocation0] sm:$0x1] %vm99_vm0, %v98_v50   ;;  %v164_v52 = vpop.permute.xlu2 %163  }
  0x9e   :  { %106 = vst.msk [vmem:[#allocation0] sm:$0x1] %vm105_vm1, %v104_v51  }
  0x9f   :  { %112 = vst.msk [vmem:[#allocation0] sm:$0x1] %vm111_vm2, %v110_v43  }
  0xa4   :  { %v116_v53 = vpop.permute.xlu0 %115   ;;  %v122_v54 = vpop.permute.xlu1 %121  }
  0xa5   :  { %118 = vst.msk [vmem:[#allocation0] sm:$0x1] %vm117_vm3, %v116_v53   ;;  %v182_v55 = vpop.permute.xlu2 %181  }
  0xa6   :  { %124 = vst.msk [vmem:[#allocation0] sm:$0x1] %vm123_vm4, %v122_v54  }
  0xa7   :  { %130 = vst.msk [vmem:[#allocation0] sm:$0x1] %vm129_vm5, %v128_v46  }
  0xac   :  { %v134_v56 = vpop.permute.xlu0 %133   ;;  %v140_v57 = vpop.permute.xlu1 %139  }
  0xad   :  { %136 = vst.msk [vmem:[#allocation0] sm:$0x1] %vm135_vm6, %v134_v56  }
  0xae   :  { %142 = vst.msk [vmem:[#allocation0] sm:$0x1] %vm141_vm7, %v140_v57  }
  0xaf   :  { %148 = vst.msk [vmem:[#allocation0] sm:$0x1] %vm147_vm8, %v146_v49  }
  0xb4   :  { %v152_v58 = vpop.permute.xlu0 %151   ;;  %v158_v59 = vpop.permute.xlu1 %157  }
  0xb5   :  { %154 = vst.msk [vmem:[#allocation0] sm:$0x1] %vm153_vm9, %v152_v58  }
  0xb6   :  { %160 = vst.msk [vmem:[#allocation0] sm:$0x1] %vm159_vm10, %v158_v59  }
  0xb7   :  { %166 = vst.msk [vmem:[#allocation0] sm:$0x1] %vm165_vm11, %v164_v52  }
  0xbc   :  { %v170_v60 = vpop.permute.xlu0 %169   ;;  %v176_v61 = vpop.permute.xlu1 %175  }
  0xbd   :  { %172 = vst.msk [vmem:[#allocation0] sm:$0x1] %vm171_vm12, %v170_v60  }
  0xbe   :  { %178 = vst.msk [vmem:[#allocation0] sm:$0x1] %vm177_vm13, %v176_v61  }
  0xbf   :  { %184 = vst.msk [vmem:[#allocation0] sm:$0x1] %vm183_vm14, %v182_v55  }
  0xc4   :  { %v188_v62 = vpop.permute.xlu0 %187  }
  0xc5   :  { %190 = vst.msk [vmem:[#allocation0] sm:$0x1] %vm189_vm15, %v188_v62  }
  0xcc   :  { %v193_v63 = vld [vmem:[#allocation0] sm:$0x1] }
  0xcd   :  { %196 = vst [vmem:[%s400_s1] sm:$0x1] %v193_v63 }

// kernel: basic_conv_block.1
= control target key start
LH: loop header
LB: loop body
LE: loop exit
PB: predicated region body
PF: predicated region fallthrough
CT: control target
= control target key end

     0   :  { %s643_s18 = smov 0   ;;  %s975_s0 = inlined_call_operand.vmem [shape: f32[2,8,128], index: 0, kind: input, shape index: {}]   ;;  %s976_s1 = inlined_call_operand.vmem [shape: f32[3,128,128], index: 1, kind: input, shape index: {}]   ;;  %s977_s2 = inlined_call_operand.vmem [shape: f32[1,128], index: 2, kind: input, shape index: {}]   ;;  %s978_s3 = inlined_call_operand.vmem [shape: f32[3,128,128], index: 3, kind: input, shape index: {}]   ;;  %s979_s4 = inlined_call_operand.vmem [shape: f32[1,128], index: 4, kind: input, shape index: {}]   ;;  %s980_s5 = inlined_call_operand.vmem [shape: f32[2,8,128], index: 5, kind: output, shape index: {}]  }
   0x1 LB: > { %s520_s19 = sadd.s32 4294967295, %s610_s18   ;;  %p524_p0 = scmp.ge.s32.totalorder %s610_s18, 1  ;;  %s610_s18 = sphi %s643_s18, %s15_s18  }
   0x2   : > { %p186_p1 = scmp.lt.s32.totalorder %s610_s18, 3 }
   0x4   : > { %p187_p2 = pnand %p524_p0, %p186_p1 }
   0x5   : > { %p660_p3 = scmp.lt.s32.totalorder (!%p187_p2), %s520_s19, 1 }
   0x6   : > { %190 = sbr.rel (%p187_p2) target bundleno = 324 (0x144), region = 40 }
   0xb   : > { %v558_v0 = vld [vmem:[%s976_s1 + $0x178] sm:$0xff]  ;;  %v557_v1 = vld [vmem:[%s976_s1 + $0x170] sm:$0xff]  ;;  %v612_v5 = vmov 0.0   ;;  %v556_v6 = vld [vmem:[%s976_s1 + $0x168] sm:$0xff]  ;;  %s983_s19 = smov (!%p660_p3, %s520_s19), 1 }
   0xc   : > { %v542_v2 = vld [vmem:[%s976_s1 + $0xf8] sm:$0xff]  ;;  %318 = vmatpush.msra.mxu2 %v558_v0  ;;  %v541_v4 = vld [vmem:[%s976_s1 + $0xf0] sm:$0xff]  ;;  %221 = vst [vmem:[#allocation2 + $0x9] sm:$0x1] %v612_v5  ;;  %v540_v8 = vld [vmem:[%s976_s1 + $0xe8] sm:$0xff]  ;;  %s525_s7 = sshll.u32 %s983_s19, 3 }
   0xd   : > { %260 = vmatpush.msra.mxu0 %v542_v2  ;;  %v241_v3 = vld [vmem:[%s976_s1 + $0x78] sm:$0xff]  ;;  %v240_v7 = vld [vmem:[%s976_s1 + $0x70] sm:$0xff]  ;;  %220 = vst [vmem:[#allocation2] sm:$0x1] %v612_v5  ;;  %v239_v9 = vld [vmem:[%s976_s1 + $0x68] sm:$0xff]  ;;  %s215_s20 = scalar_lea.vmem %s975_s0, %s525_s7  ;;  %s219_s23 = scalar_lea.vmem %s980_s5, %s525_s7 }
   0xe   : > { %280 = vmatpush.msra.mxu1 %v241_v3  ;;  %319 = vmatpush.msra.mxu2 %v557_v1  ;;  %v555_v10 = vld [vmem:[%s976_s1 + $0x160] sm:$0xff]  ;;  %v554_v13 = vld [vmem:[%s976_s1 + $0x158] sm:$0xff]  ;;  %v553_v16 = vld [vmem:[%s976_s1 + $0x150] sm:$0xff] }
   0xf   : > { %261 = vmatpush.msra.mxu0 %v541_v4  ;;  %v539_v11 = vld [vmem:[%s976_s1 + $0xe0] sm:$0xff]  ;;  %v538_v14 = vld [vmem:[%s976_s1 + $0xd8] sm:$0xff]  ;;  %v537_v17 = vld [vmem:[%s976_s1 + $0xd0] sm:$0xff] }
  0x10   : > { %281 = vmatpush.msra.mxu1 %v240_v7  ;;  %320 = vmatpush.msra.mxu2 %v556_v6  ;;  %v238_v12 = vld [vmem:[%s976_s1 + $0x60] sm:$0xff]  ;;  %v237_v15 = vld [vmem:[%s976_s1 + $0x58] sm:$0xff]  ;;  %v236_v18 = vld [vmem:[%s976_s1 + $0x50] sm:$0xff] }
  0x11   : > { %262 = vmatpush.msra.mxu0 %v540_v8  ;;  %v552_v19 = vld [vmem:[%s976_s1 + $0x148] sm:$0xff]  ;;  %v551_v22 = vld [vmem:[%s976_s1 + $0x140] sm:$0xff]  ;;  %v550_v25 = vld [vmem:[%s976_s1 + $0x138] sm:$0xff] }
  0x12   : > { %282 = vmatpush.msra.mxu1 %v239_v9  ;;  %321 = vmatpush.msra.mxu2 %v555_v10  ;;  %v536_v20 = vld [vmem:[%s976_s1 + $0xc8] sm:$0xff]  ;;  %v535_v23 = vld [vmem:[%s976_s1 + $0xc0] sm:$0xff]  ;;  %v534_v26 = vld [vmem:[%s976_s1 + $0xb8] sm:$0xff] }
  0x13   : > { %263 = vmatpush.msra.mxu0 %v539_v11  ;;  %v235_v21 = vld [vmem:[%s976_s1 + $0x48] sm:$0xff]  ;;  %v234_v24 = vld [vmem:[%s976_s1 + $0x40] sm:$0xff]  ;;  %v233_v28 = vld [vmem:[%s976_s1 + $0x38] sm:$0xff] }
  0x14   : > { %283 = vmatpush.msra.mxu1 %v238_v12  ;;  %322 = vmatpush.msra.mxu2 %v554_v13  ;;  %v743_v27 = vld [vmem:[%s215_s20] sm:$0xff]  ;;  %v549_v30 = vld [vmem:[%s976_s1 + $0x130] sm:$0xff]  ;;  %v574_v32 = vld [vmem:[%s978_s3 + $0xf8] sm:$0xff] }
  0x15   : > { %264 = vmatpush.msra.mxu0 %v538_v14  ;;  %v223_v29 = vmax.f32 %v743_v27, 0.0  ;;  %v533_v31 = vld [vmem:[%s976_s1 + $0xb0] sm:$0xff]  ;;  %v548_v35 = vld [vmem:[%s976_s1 + $0x128] sm:$0xff]  ;;  %381 = vmatpush.msra.mxu3 %v574_v32  ;;  %v547_v39 = vld [vmem:[%s976_s1 + $0x120] sm:$0xff] }
  0x16   : > { %284 = vmatpush.msra.mxu1 %v237_v15  ;;  %323 = vmatpush.msra.mxu2 %v553_v16  ;;  %v232_v33 = vld [vmem:[%s976_s1 + $0x30] sm:$0xff]  ;;  %v532_v36 = vld [vmem:[%s976_s1 + $0xa8] sm:$0xff]  ;;  %v531_v40 = vld [vmem:[%s976_s1 + $0xa0] sm:$0xff] }
  0x17   : > { %265 = vmatpush.msra.mxu0 %v537_v17  ;;  %224 = vst [vmem:[#allocation2 + $0x1] sm:$0xff] %v223_v29  ;;  %v573_v34 = vld [vmem:[%s978_s3 + $0xf0] sm:$0xff]  ;;  %v231_v37 = vld [vmem:[%s976_s1 + $0x28] sm:$0xff]  ;;  %v230_v41 = vld [vmem:[%s976_s1 + $0x20] sm:$0xff] }
  0x18   : > { %285 = vmatpush.msra.mxu1 %v236_v18  ;;  %324 = vmatpush.msra.mxu2 %v552_v19  ;;  %v572_v38 = vld [vmem:[%s978_s3 + $0xe8] sm:$0xff]  ;;  %v571_v42 = vld [vmem:[%s978_s3 + $0xe0] sm:$0xff]  ;;  %v546_v43 = vld [vmem:[%s976_s1 + $0x118] sm:$0xff] }
  0x19   : > { %266 = vmatpush.msra.mxu0 %v536_v20  ;;  %382 = vmatpush.msra.mxu3 %v573_v34  ;;  %v530_v44 = vld [vmem:[%s976_s1 + $0x98] sm:$0xff]  ;;  %v545_v47 = vld [vmem:[%s976_s1 + $0x110] sm:$0xff]  ;;  %v544_v51 = vld [vmem:[%s976_s1 + $0x108] sm:$0xff] }
  0x1a   : > { %286 = vmatpush.msra.mxu1 %v235_v21  ;;  %325 = vmatpush.msra.mxu2 %v551_v22  ;;  %v229_v45 = vld [vmem:[%s976_s1 + $0x18] sm:$0xff]  ;;  %v529_v48 = vld [vmem:[%s976_s1 + $0x90] sm:$0xff]  ;;  %v528_v52 = vld [vmem:[%s976_s1 + $0x88] sm:$0xff] }
  0x1b   : > { %267 = vmatpush.msra.mxu0 %v535_v23  ;;  %383 = vmatpush.msra.mxu3 %v572_v38  ;;  %v570_v46 = vld [vmem:[%s978_s3 + $0xd8] sm:$0xff]  ;;  %v228_v49 = vld [vmem:[%s976_s1 + $0x10] sm:$0xff]  ;;  %v227_v53 = vld [vmem:[%s976_s1 + $0x8] sm:$0xff] }
  0x1c   : > { %287 = vmatpush.msra.mxu1 %v234_v24  ;;  %326 = vmatpush.msra.mxu2 %v550_v25  ;;  %v569_v50 = vld [vmem:[%s978_s3 + $0xd0] sm:$0xff]  ;;  %v568_v54 = vld [vmem:[%s978_s3 + $0xc8] sm:$0xff]  ;;  %v543_v55 = vld [vmem:[%s976_s1 + $0x100] sm:$0xff] }
  0x1d   : > { %268 = vmatpush.msra.mxu0 %v534_v26  ;;  %384 = vmatpush.msra.mxu3 %v571_v42  ;;  %v527_v56 = vld [vmem:[%s976_s1 + $0x80] sm:$0xff]  ;;  %v362_v60 = vld [vmem:[%s978_s3 + $0x78] sm:$0xff]  ;;  %v361_v62 = vld [vmem:[%s978_s3 + $0x70] sm:$0xff] }
  0x1e   : > { %288 = vmatpush.msra.mxu1 %v233_v28  ;;  %327 = vmatpush.msra.mxu2 %v549_v30  ;;  %v300_v57 = vld [vmem:[#allocation2 + $0x2] sm:$0xff]  ;;  %v590_v61 = vld [vmem:[%s978_s3 + $0x178] sm:$0xff]  ;;  %v589_v63 = vld [vmem:[%s978_s3 + $0x170] sm:$0xff] }
  0x1f   : > { %269 = vmatpush.msra.mxu0 %v533_v31  ;;  %385 = vmatpush.msra.mxu3 %v570_v46  ;;  %v226_v58 = vld [vmem:[%s976_s1] sm:$0xff]  ;;  %v360_v0 = vld [vmem:[%s978_s3 + $0x68] sm:$0xff]  ;;  %v358_v4 = vld [vmem:[%s978_s3 + $0x58] sm:$0xff] }
  0x20   : > { %289 = vmatpush.msra.mxu1 %v232_v33  ;;  %328 = vmatpush.msra.mxu2 %v548_v35  ;;  %v225_v59 = vld [vmem:[#allocation2] sm:$0xff]  ;;  %v588_v1 = vld [vmem:[%s978_s3 + $0x168] sm:$0xff]  ;;  %v586_v5 = vld [vmem:[%s978_s3 + $0x158] sm:$0xff] }
  0x21   : > { %270 = vmatpush.msra.mxu0 %v532_v36  ;;  %386 = vmatpush.msra.mxu3 %v569_v50  ;;  %v359_v2 = vld [vmem:[%s978_s3 + $0x60] sm:$0xff]  ;;  %v357_v6 = vld [vmem:[%s978_s3 + $0x50] sm:$0xff]  ;;  %v356_v8 = vld [vmem:[%s978_s3 + $0x48] sm:$0xff] }
  0x22   : > { %290 = vmatpush.msra.mxu1 %v231_v37  ;;  %329 = vmatpush.msra.mxu2 %v547_v39  ;;  %v587_v3 = vld [vmem:[%s978_s3 + $0x160] sm:$0xff]  ;;  %v585_v7 = vld [vmem:[%s978_s3 + $0x150] sm:$0xff]  ;;  %v584_v9 = vld [vmem:[%s978_s3 + $0x148] sm:$0xff] }
  0x23   : > { %271 = vmatpush.msra.mxu0 %v531_v40  ;;  %387 = vmatpush.msra.mxu3 %v568_v54  ;;  %v567_v10 = vld [vmem:[%s978_s3 + $0xc0] sm:$0xff]  ;;  %v566_v11 = vld [vmem:[%s978_s3 + $0xb8] sm:$0xff]  ;;  %v565_v12 = vld [vmem:[%s978_s3 + $0xb0] sm:$0xff] }
  0x24   : > { %291 = vmatpush.msra.mxu1 %v230_v41  ;;  %330 = vmatpush.msra.mxu2 %v546_v43  ;;  %v564_v13 = vld [vmem:[%s978_s3 + $0xa8] sm:$0xff]  ;;  %v355_v14 = vld [vmem:[%s978_s3 + $0x40] sm:$0xff]  ;;  %v354_v17 = vld [vmem:[%s978_s3 + $0x38] sm:$0xff] }
  0x25   : > { %272 = vmatpush.msra.mxu0 %v530_v44  ;;  %388 = vmatpush.msra.mxu3 %v567_v10  ;;  %v583_v15 = vld [vmem:[%s978_s3 + $0x140] sm:$0xff]  ;;  %v582_v18 = vld [vmem:[%s978_s3 + $0x138] sm:$0xff]  ;;  %v353_v20 = vld [vmem:[%s978_s3 + $0x30] sm:$0xff] }
  0x26   : > { %292 = vmatpush.msra.mxu1 %v229_v45  ;;  %331 = vmatpush.msra.mxu2 %v545_v47  ;;  %v563_v16 = vld [vmem:[%s978_s3 + $0xa0] sm:$0xff]  ;;  %v562_v19 = vld [vmem:[%s978_s3 + $0x98] sm:$0xff]  ;;  %v581_v21 = vld [vmem:[%s978_s3 + $0x130] sm:$0xff] }
  0x27   : > { %273 = vmatpush.msra.mxu0 %v529_v48  ;;  %389 = vmatpush.msra.mxu3 %v566_v11  ;;  %v561_v22 = vld [vmem:[%s978_s3 + $0x90] sm:$0xff]  ;;  %v352_v23 = vld [vmem:[%s978_s3 + $0x28] sm:$0xff]  ;;  %v351_v26 = vld [vmem:[%s978_s3 + $0x20] sm:$0xff] }
  0x28   : > { %293 = vmatpush.msra.mxu1 %v228_v49  ;;  %332 = vmatpush.msra.mxu2 %v544_v51  ;;  %v580_v24 = vld [vmem:[%s978_s3 + $0x128] sm:$0xff]  ;;  %v579_v28 = vld [vmem:[%s978_s3 + $0x120] sm:$0xff]  ;;  %v350_v30 = vld [vmem:[%s978_s3 + $0x18] sm:$0xff] }
  0x29   : > { %274 = vmatpush.msra.mxu0 %v528_v52  ;;  %390 = vmatpush.msra.mxu3 %v565_v12  ;;  %v560_v25 = vld [vmem:[%s978_s3 + $0x88] sm:$0xff]  ;;  %v578_v31 = vld [vmem:[%s978_s3 + $0x118] sm:$0xff]  ;;  %v349_v32 = vld [vmem:[%s978_s3 + $0x10] sm:$0xff] }
  0x2a   : > { %294 = vmatpush.msra.mxu1 %v227_v53  ;;  %333 = vmatpush.msra.mxu2 %v543_v55  ;;  %v577_v33 = vld [vmem:[%s978_s3 + $0x110] sm:$0xff]  ;;  %v348_v34 = vld [vmem:[%s978_s3 + $0x8] sm:$0xff]  ;;  %v347_v36 = vld [vmem:[%s978_s3] sm:$0xff] }
  0x2b   : > { %275 = vmatpush.msra.mxu0 %v527_v56  ;;  %334 = vmatmul.f32.vlgmr.msra.gmra.mxu2 %v300_v57  ;;  %v576_v35 = vld [vmem:[%s978_s3 + $0x108] sm:$0xff]  ;;  %v575_v37 = vld [vmem:[%s978_s3 + $0x100] sm:$0xff] }
  0x2c   : > { %295 = vmatpush.msra.mxu1 %v226_v58  ;;  %276 = vmatmul.f32.vlgmr.msra.gmra.mxu0 %v223_v29  ;;  %v559_v29 = vld [vmem:[%s978_s3 + $0x80] sm:$0xff] }
  0x2d   : > { %296 = vmatmul.f32.vlgmr.msra.gmra.mxu1 %v225_v59  ;;  %401 = vmatpush.msrb.mxu0 %v362_v60  ;;  %v602_v41 = vld [vmem:[%s977_s2] ss:$0 sm:$0xff] }
  0x2e   : > { %439 = vmatpush.msrb.mxu1 %v590_v61  ;;  %391 = vmatpush.msra.mxu3 %v564_v13  ;;  %v603_v51 = vld [vmem:[%s979_s4] ss:$0 sm:$0xff] }
  0x2f   : > { %402 = vmatpush.msrb.mxu0 %v361_v62 }
  0x30   : > { %440 = vmatpush.msrb.mxu1 %v589_v63  ;;  %392 = vmatpush.msra.mxu3 %v563_v16 }
  0x31   : > { %403 = vmatpush.msrb.mxu0 %v360_v0 }
  0x32   : > { %441 = vmatpush.msrb.mxu1 %v588_v1  ;;  %393 = vmatpush.msra.mxu3 %v562_v19 }
  0x33   : > { %404 = vmatpush.msrb.mxu0 %v359_v2 }
  0x34   : > { %442 = vmatpush.msrb.mxu1 %v587_v3  ;;  %394 = vmatpush.msra.mxu3 %v561_v22 }
  0x35   : > { %405 = vmatpush.msrb.mxu0 %v358_v4 }
  0x36   : > { %443 = vmatpush.msrb.mxu1 %v586_v5  ;;  %395 = vmatpush.msra.mxu3 %v560_v25 }
  0x37   : > { %406 = vmatpush.msrb.mxu0 %v357_v6 }
  0x38   : > { %444 = vmatpush.msrb.mxu1 %v585_v7  ;;  %396 = vmatpush.msra.mxu3 %v559_v29 }
  0x39   : > { %407 = vmatpush.msrb.mxu0 %v356_v8 }
  0x3a   : > { %445 = vmatpush.msrb.mxu1 %v584_v9 }
  0x3b   : > { %408 = vmatpush.msrb.mxu0 %v355_v14 }
  0x3c   : > { %446 = vmatpush.msrb.mxu1 %v583_v15 }
  0x3d   : > { %409 = vmatpush.msrb.mxu0 %v354_v17 }
  0x3e   : > { %447 = vmatpush.msrb.mxu1 %v582_v18 }
  0x3f   : > { %410 = vmatpush.msrb.mxu0 %v353_v20 }
  0x40   : > { %448 = vmatpush.msrb.mxu1 %v581_v21 }
  0x41   : > { %411 = vmatpush.msrb.mxu0 %v352_v23 }
  0x42   : > { %449 = vmatpush.msrb.mxu1 %v580_v24 }
  0x43   : > { %412 = vmatpush.msrb.mxu0 %v351_v26 }
  0x44   : > { %450 = vmatpush.msrb.mxu1 %v579_v28 }
  0x45   : > { %413 = vmatpush.msrb.mxu0 %v350_v30 }
  0x46   : > { %451 = vmatpush.msrb.mxu1 %v578_v31 }
  0x47   : > { %414 = vmatpush.msrb.mxu0 %v349_v32 }
  0x48   : > { %452 = vmatpush.msrb.mxu1 %v577_v33 }
  0x49   : > { %415 = vmatpush.msrb.mxu0 %v348_v34 }
  0x4a   : > { %453 = vmatpush.msrb.mxu1 %v576_v35 }
  0x4b   : > { %416 = vmatpush.msrb.mxu0 %v347_v36 }
  0x4c   : > { %454 = vmatpush.msrb.mxu1 %v575_v37 }
  0xa9   : > { %v277_v38 = vpop.f32.mrf.mxu0 }
  0xaa   : > { %v297_v39 = vpop.f32.mrf.mxu1 }
  0xab   : > { %v298_v40 = vadd.f32 %v297_v39, %v277_v38 }
  0xae   : > { %v335_v42 = vpop.f32.mrf.mxu2 }
  0xaf   : > { %v338_v43 = vadd.f32 %v335_v42, %v298_v40 }
  0xb1   : > { %v343_v44 = vadd.f32 %v602_v41, %v338_v43 }
  0xb3   : > { %v344_v45 = vmax.f32 %v343_v44, 0.0 }
  0xb5   : > { %345 = vst [vmem:[#allocation2 + $0x1] sm:$0xff] %v344_v45  ;;  %397 = vmatmul.f32.vlgmr.msra.gmra.mxu3 %v344_v45 }
  0xbc   : > { %v346_v46 = vld [vmem:[#allocation2] sm:$0xff] }
  0xbd   : > { %v421_v47 = vld [vmem:[#allocation2 + $0x2] sm:$0xff]  ;;  %417 = vmatmul.f32.vlgmr.msrb.gmra.mxu0 %v346_v46 }
  0xbe   : > { %455 = vmatmul.f32.vlgmr.msrb.gmra.mxu1 %v421_v47 }
 0x138   : > { %v398_v49 = vpop.f32.mrf.mxu3 }
 0x13a   : > { %v418_v48 = vpop.f32.mrf.mxu0 }
 0x13b   : > { %v419_v50 = vadd.f32 %v418_v48, %v398_v49  ;;  %v456_v52 = vpop.f32.mrf.mxu1 }
 0x13d   : > { %v459_v53 = vadd.f32 %v456_v52, %v419_v50 }
 0x13f   : > { %v464_v54 = vadd.f32 %v603_v51, %v459_v53 }
 0x141   : > { %v465_v55 = vadd.f32 %v464_v54, %v743_v27 }
 0x143   : > { %466 = vst [vmem:[%s219_s23] sm:$0xff] %v465_v55 }
 0x144 PF: > { %s15_s18 = sadd.s32 1, %s610_s18  }
 0x145   : > { %p12_p4 = scmp.ge.s32.totalorder %s15_s18, 4  }
 0x147   :  { %14 = sbr.rel (!%p12_p4) target bundleno = 1 (0x1), region = 74 }

</bundles_post_ra>
